<compile_context>
chip_gen: v7x
topology: tpu7x:2x2x1
jax: 0.10.0
libtpu: 0.0.40
codegen_flags: <defaults>
</compile_context>

<pallas_src>
import numpy as np
import jax
import jax.numpy as jnp
from jax import lax
from jax.experimental import pallas as pl
from jax.experimental.pallas import tpu as pltpu


# ------------------------------ Pallas kernel -------------------------------

def _make_maskgen_kernel(offsets, block_n, l, cin, c):
    """Fused grouped-conv3x3 + BN + ReLU + adaptive-avg-pool + grouped-fc + gate.

    Per grid step (one block of `block_n` samples):
      x_ref:     (B, Cin, Lp) bf16  zero-padded, CHW-flat spatial (lane = Lp)
      w_ref:     (C, 9*Cin)   bf16  merged-tap block-diagonal conv weight (BN scale folded)
      shift_ref: (C, 1)       f32   folded BN shift
      qT_ref:    (L, mm)      bf16  exact AdaptiveAvgPool2d matrix (padded-flat idx)
      wd_ref:    (G, C)       f32   block-diagonal (class1 - class0) fc weight
      bd_ref:    (G, 1)       f32   (class1 - class0) fc bias
      o_ref:     (B, G, mm)   f32   hard gate in {0, 1}
    """
    def kernel(x_ref, w_ref, shift_ref, qT_ref, wd_ref, bd_ref, o_ref):
        w = w_ref[...]                                   # (C, 9*Cin) bf16
        qT = qT_ref[...]                                 # (L, mm)    bf16
        shift = shift_ref[...]                           # (C, 1)     f32
        wd = wd_ref[...]                                 # (G, C)     f32
        bd = bd_ref[...]                                 # (G, 1)     f32
        for b in range(block_n):                         # small, statically unrolled
            xs = x_ref[b]                                # (Cin, Lp) bf16
            # Merged tap slab: 9 shifted lane-slices stacked on the K dim.
            slab = jnp.concatenate(
                [lax.slice(xs, (0, off), (cin, off + l)) for off in offsets],
                axis=0)                                  # (9*Cin, L)
            acc = jnp.dot(w, slab,
                          preferred_element_type=jnp.float32)       # (C, L) f32
            y = jnp.maximum(acc + shift, 0.0)                        # BN shift + ReLU
            pooled = jnp.dot(y.astype(jnp.bfloat16), qT,
                             preferred_element_type=jnp.float32)     # (C, mm)
            z = jnp.dot(wd, pooled,
                        preferred_element_type=jnp.float32) + bd     # (G, mm)
            # Hard Gumbel-softmax (eval): argmax over 2 classes, take class 1.
            # Ties -> class 0 (matches torch.max first-index behavior).
            o_ref[b] = (z > 0.0).astype(jnp.float32)
    return kernel


# ------------------------------- glue / wrapper -----------------------------

def _adaptive_pool_matrix(in_size, out_size):
    """Row-stochastic matrix reproducing nn.AdaptiveAvgPool2d windowing."""
    p = np.zeros((out_size, in_size), dtype=np.float32)
    for i in range(out_size):
        s = (i * in_size) // out_size
        e = ((i + 1) * in_size + out_size - 1) // out_size
        p[i, s:e] = 1.0 / (e - s)
    return p


def mask_gen_forward(x_nchw, params, *, groups, mask_size, temperature=1.0,
                     block_n=16):
    del temperature  # argmax of a tempered softmax is temperature-invariant
    conv_w = params["conv_w"]      # (G*4, Cin//G, 3, 3)
    bn_scale = params["bn_scale"]  # (G*4,)
    bn_shift = params["bn_shift"]  # (G*4,)
    fc_w = params["fc_w"]          # (G*2, 4)
    fc_b = params["fc_b"]          # (G*2,)

    n, cin, hh, ww = x_nchw.shape
    g = groups
    assert cin % g == 0
    cin_g = cin // g
    c = 4 * g
    hp, wp = hh + 2, ww + 2
    lp = hp * wp
    l = hh * wp - 2                    # padded-flat span covering all valid outputs
    mm = mask_size * mask_size
    offsets = tuple(dy * wp + dx for dy in range(3) for dx in range(3))

    # ---- batch block size: amortize grid-step overhead, keep grid >= 2 ----
    block_n = max(1, min(block_n, pl.cdiv(n, 2)))
    n_pad = pl.cdiv(n, block_n) * block_n
    n_blocks = n_pad // block_n

    # ---- x: CHW-flat padded spatial (N, Cin, Lp), lane dim = Lp, bf16 ----
    xp = jnp.pad(x_nchw, ((0, 0), (0, 0), (1, 1), (1, 1))).reshape(n, cin, lp)
    if n_pad != n:
        xp = jnp.pad(xp, ((0, n_pad - n), (0, 0), (0, 0)))
    xp = xp.astype(jnp.bfloat16)

    # ---- merged-tap block-diagonal conv weight, BN scale folded: (C, 9*Cin) ----
    ws = conv_w * bn_scale[:, None, None, None]                   # (C, cin_g, 3, 3)
    ws = jnp.transpose(ws, (2, 3, 1, 0)).reshape(9, cin_g, c)     # t = 3*dy + dx
    gsel = np.kron(np.eye(g, dtype=np.float32),
                   np.ones((1, 4), np.float32))                   # (g, C): 1 iff co//4 == gi
    w_taps = (ws[:, None, :, :] *
              jnp.asarray(gsel)[None, :, None, :]).reshape(9, cin, c)
    w_big = jnp.transpose(w_taps.reshape(9 * cin, c), (1, 0)).astype(jnp.bfloat16)
    shift = bn_shift.reshape(c, 1).astype(jnp.float32)

    # ---- exact AdaptiveAvgPool2d as an (L, mm) matrix over padded-flat idx ----
    ph = _adaptive_pool_matrix(hh, mask_size)
    pw = _adaptive_pool_matrix(ww, mask_size)
    q_np = np.zeros((mm, l), dtype=np.float32)
    for i in range(mask_size):
        for j in range(mask_size):
            row = i * mask_size + j
            for y in range(hh):
                if ph[i, y] == 0.0:
                    continue
                for x in range(ww):
                    v = ph[i, y] * pw[j, x]
                    if v != 0.0:
                        q_np[row, y * wp + x] = v
    qT = jnp.asarray(q_np.T).astype(jnp.bfloat16)                 # (L, mm)

    # ---- grouped 1x1 fc folded into class-difference form: (G, C), (G, 1) ----
    fcw = fc_w.reshape(g, 2, 4)
    d_w = fcw[:, 1, :] - fcw[:, 0, :]                             # (g, 4)
    eye = jnp.eye(g, dtype=d_w.dtype)
    wd = (eye[:, :, None] * d_w[None, :, :]).reshape(g, c).astype(jnp.float32)
    bd = (fc_b[1::2] - fc_b[0::2]).reshape(g, 1).astype(jnp.float32)

    kernel = _make_maskgen_kernel(offsets, block_n, l, cin, c)
    gates = pl.pallas_call(
        kernel,
        out_shape=jax.ShapeDtypeStruct((n_pad, g, mm), jnp.float32),
        grid_spec=pltpu.PrefetchScalarGridSpec(
            num_scalar_prefetch=0,
            grid=(n_blocks,),
            in_specs=[
                pl.BlockSpec((block_n, cin, lp), lambda ni: (ni, 0, 0)),
                pl.BlockSpec((c, 9 * cin), lambda ni: (0, 0)),
                pl.BlockSpec((c, 1), lambda ni: (0, 0)),
                pl.BlockSpec((l, mm), lambda ni: (0, 0)),
                pl.BlockSpec((g, c), lambda ni: (0, 0)),
                pl.BlockSpec((g, 1), lambda ni: (0, 0)),
            ],
            out_specs=pl.BlockSpec((block_n, g, mm), lambda ni: (ni, 0, 0)),
        ),
        compiler_params=pltpu.CompilerParams(
            dimension_semantics=("parallel",)),
    )(xp, w_big, shift, qT, wd, bd)

    gates = gates[:n]                                             # drop batch padding
    return gates.reshape(n, g, mask_size, mask_size)


# ------------------------------ pure-JAX reference --------------------------

def mask_gen_reference(x_nchw, params, *, groups, mask_size):
    g = groups
    conv_w, bn_scale, bn_shift = params["conv_w"], params["bn_scale"], params["bn_shift"]
    fc_w, fc_b = params["fc_w"], params["fc_b"]
    out = lax.conv_general_dilated(
        x_nchw, conv_w, window_strides=(1, 1), padding=((1, 1), (1, 1)),
        dimension_numbers=("NCHW", "OIHW", "NCHW"), feature_group_count=g)
    out = out * bn_scale[None, :, None, None] + bn_shift[None, :, None, None]
    out = jnp.maximum(out, 0.0)
    n, _, hh, ww = out.shape
    ph = jnp.asarray(_adaptive_pool_matrix(hh, mask_size))
    pw = jnp.asarray(_adaptive_pool_matrix(ww, mask_size))
    pooled = jnp.einsum("ih,nchw,jw->ncij", ph, out, pw)
    pr = pooled.reshape(n, g, 4, mask_size, mask_size)
    wr = fc_w.reshape(g, 2, 4)
    br = fc_b.reshape(g, 2)
    z = jnp.einsum("gkc,ngcij->ngkij", wr, pr) + br[None, :, :, None, None]
    margin = z[:, :, 1] - z[:, :, 0]
    gate = (margin > 0).astype(jnp.float32)
    return gate, margin


# ----------------------------------- main ------------------------------------

if __name__ == "__main__":
    groups = 2
    inplanes = 16
    mask_size = 7
    n, hh, ww = 2, 14, 14

    key = jax.random.PRNGKey(0)
    k1, k2, k3, k4, k5, k6, kx = jax.random.split(key, 7)

    conv_w = 0.1 * jax.random.normal(k1, (groups * 4, inplanes // groups, 3, 3), jnp.float32)
    bn_gamma = 1.0 + 0.1 * jax.random.normal(k2, (groups * 4,), jnp.float32)
    bn_beta = 0.1 * jax.random.normal(k3, (groups * 4,), jnp.float32)
    bn_mean = 0.1 * jax.random.normal(k4, (groups * 4,), jnp.float32)
    bn_var = jnp.abs(jax.random.normal(k5, (groups * 4,), jnp.float32)) + 0.5
    eps = 1e-5
    bn_scale = bn_gamma / jnp.sqrt(bn_var + eps)
    bn_shift = bn_beta - bn_mean * bn_scale

    # fc_gs: Conv2d(groups*4, groups*2, 1, bias=True, groups=groups)
    # bias init exactly as in __init__: even-indexed = 1.0, odd-indexed = 10.0
    fc_w = 4.0 * jax.random.normal(k6, (groups * 2, 4), jnp.float32)
    fc_b = jnp.zeros((groups * 2,), jnp.float32).at[0::2].set(1.0).at[1::2].set(10.0)

    params = dict(conv_w=conv_w, bn_scale=bn_scale, bn_shift=bn_shift,
                  fc_w=fc_w, fc_b=fc_b)

    x = jax.random.normal(kx, (n, inplanes, hh, ww), jnp.float32)

    out = mask_gen_forward(x, params, groups=groups, mask_size=mask_size)
    out = jax.block_until_ready(out)

    ref, margin = mask_gen_reference(x, params, groups=groups, mask_size=mask_size)
    assert out.shape == (n, groups, mask_size, mask_size)
    # Compare only where the decision is numerically unambiguous (bf16 matmuls
    # can flip margins very close to zero; the gate semantics are unchanged).
    decisive = jnp.abs(margin) > 0.25
    assert bool(jnp.all(jnp.where(decisive, out == ref, True))), "mismatch vs reference"

    print("KERNEL_OK")
</pallas_src>

<mosaic_0001>
module attributes {stable_mosaic.version = 11 : i64} {
  func.func @kernel(%arg0: i32, %arg1: memref<1x16x256xbf16, #tpu.memory_space<vmem>>, %arg2: memref<8x144xbf16, #tpu.memory_space<vmem>>, %arg3: memref<8x1xf32, #tpu.memory_space<vmem>>, %arg4: memref<222x49xbf16, #tpu.memory_space<vmem>>, %arg5: memref<2x8xf32, #tpu.memory_space<vmem>>, %arg6: memref<2x1xf32, #tpu.memory_space<vmem>>, %arg7: memref<1x2x49xf32, #tpu.memory_space<vmem>>) attributes {dimension_semantics = [#tpu.dimension_semantics<parallel>], iteration_bounds = array<i64: 2>, scalar_prefetch = 0 : i64, scratch_operands = 0 : i64, tpu.core_type = #tpu.core_type<tc>, window_params = [{transform_indices = @transform_0, window_bounds = array<i64: 1, 16, 256>}, {pipeline_mode = #tpu.pipeline_mode<synchronous>, transform_indices = @transform_1, window_bounds = array<i64: 8, 144>}, {pipeline_mode = #tpu.pipeline_mode<synchronous>, transform_indices = @transform_2, window_bounds = array<i64: 8, 1>}, {pipeline_mode = #tpu.pipeline_mode<synchronous>, transform_indices = @transform_3, window_bounds = array<i64: 222, 49>}, {pipeline_mode = #tpu.pipeline_mode<synchronous>, transform_indices = @transform_4, window_bounds = array<i64: 2, 8>}, {pipeline_mode = #tpu.pipeline_mode<synchronous>, transform_indices = @transform_5, window_bounds = array<i64: 2, 1>}, {transform_indices = @transform_6, window_bounds = array<i64: 1, 2, 49>}]} {
    %c0 = arith.constant 0 : index
    %c0_0 = arith.constant 0 : index
    %0 = vector.load %arg2[%c0, %c0_0] : memref<8x144xbf16, #tpu.memory_space<vmem>>, vector<8x144xbf16>
    %c0_1 = arith.constant 0 : index
    %c0_2 = arith.constant 0 : index
    %1 = vector.load %arg4[%c0_1, %c0_2] : memref<222x49xbf16, #tpu.memory_space<vmem>>, vector<222x49xbf16>
    %c0_3 = arith.constant 0 : index
    %c0_4 = arith.constant 0 : index
    %2 = vector.load %arg3[%c0_3, %c0_4] : memref<8x1xf32, #tpu.memory_space<vmem>>, vector<8x1xf32>
    %c0_5 = arith.constant 0 : index
    %c0_6 = arith.constant 0 : index
    %3 = vector.load %arg5[%c0_5, %c0_6] : memref<2x8xf32, #tpu.memory_space<vmem>>, vector<2x8xf32>
    %c0_7 = arith.constant 0 : index
    %c0_8 = arith.constant 0 : index
    %4 = vector.load %arg6[%c0_7, %c0_8] : memref<2x1xf32, #tpu.memory_space<vmem>>, vector<2x1xf32>
    %c0_9 = arith.constant 0 : index
    %c0_10 = arith.constant 0 : index
    %c0_11 = arith.constant 0 : index
    %5 = vector.load %arg1[%c0_9, %c0_10, %c0_11] : memref<1x16x256xbf16, #tpu.memory_space<vmem>>, vector<1x16x256xbf16>
    %6 = vector.shape_cast %5 : vector<1x16x256xbf16> to vector<16x256xbf16>
    %7 = vector.extract_strided_slice %6 {offsets = [0, 0], sizes = [16, 222], strides = [1, 1]} : vector<16x256xbf16> to vector<16x222xbf16>
    %8 = vector.extract_strided_slice %6 {offsets = [0, 1], sizes = [16, 222], strides = [1, 1]} : vector<16x256xbf16> to vector<16x222xbf16>
    %9 = vector.extract_strided_slice %6 {offsets = [0, 2], sizes = [16, 222], strides = [1, 1]} : vector<16x256xbf16> to vector<16x222xbf16>
    %10 = vector.extract_strided_slice %6 {offsets = [0, 16], sizes = [16, 222], strides = [1, 1]} : vector<16x256xbf16> to vector<16x222xbf16>
    %11 = vector.extract_strided_slice %6 {offsets = [0, 17], sizes = [16, 222], strides = [1, 1]} : vector<16x256xbf16> to vector<16x222xbf16>
    %12 = vector.extract_strided_slice %6 {offsets = [0, 18], sizes = [16, 222], strides = [1, 1]} : vector<16x256xbf16> to vector<16x222xbf16>
    %13 = vector.extract_strided_slice %6 {offsets = [0, 32], sizes = [16, 222], strides = [1, 1]} : vector<16x256xbf16> to vector<16x222xbf16>
    %14 = vector.extract_strided_slice %6 {offsets = [0, 33], sizes = [16, 222], strides = [1, 1]} : vector<16x256xbf16> to vector<16x222xbf16>
    %15 = vector.extract_strided_slice %6 {offsets = [0, 34], sizes = [16, 222], strides = [1, 1]} : vector<16x256xbf16> to vector<16x222xbf16>
    %16 = tpu.concatenate %7, %8, %9, %10, %11, %12, %13, %14, %15 in 0 : vector<16x222xbf16>, vector<16x222xbf16>, vector<16x222xbf16>, vector<16x222xbf16>, vector<16x222xbf16>, vector<16x222xbf16>, vector<16x222xbf16>, vector<16x222xbf16>, vector<16x222xbf16> -> vector<144x222xbf16>
    %cst = arith.constant dense<0.000000e+00> : vector<8x222xf32>
    %17 = tpu.matmul %0, %16, %cst {dimension_numbers = #tpu.dot_dimension_numbers<[1], [0], [0], [1], [0, 0, 1, 1], [], []>} : vector<8x144xbf16>, vector<144x222xbf16>, vector<8x222xf32> -> vector<8x222xf32>
    %18 = vector.broadcast %2 : vector<8x1xf32> to vector<8x222xf32>
    %19 = arith.addf %17, %18 : vector<8x222xf32>
    %cst_12 = arith.constant 0.000000e+00 : f32
    %20 = vector.broadcast %cst_12 : f32 to vector<8x222xf32>
    %21 = arith.maximumf %19, %20 : vector<8x222xf32>
    %22 = arith.truncf %21 : vector<8x222xf32> to vector<8x222xbf16>
    %cst_13 = arith.constant dense<0.000000e+00> : vector<8x49xf32>
    %23 = tpu.matmul %22, %1, %cst_13 {dimension_numbers = #tpu.dot_dimension_numbers<[1], [0], [0], [1], [0, 0, 1, 1], [], []>} : vector<8x222xbf16>, vector<222x49xbf16>, vector<8x49xf32> -> vector<8x49xf32>
    %cst_14 = arith.constant dense<0.000000e+00> : vector<2x49xf32>
    %24 = tpu.matmul %3, %23, %cst_14 {dimension_numbers = #tpu.dot_dimension_numbers<[1], [0], [0], [1], [0, 0, 1, 1], [], []>} : vector<2x8xf32>, vector<8x49xf32>, vector<2x49xf32> -> vector<2x49xf32>
    %25 = vector.broadcast %4 : vector<2x1xf32> to vector<2x49xf32>
    %26 = arith.addf %24, %25 : vector<2x49xf32>
    %cst_15 = arith.constant 0.000000e+00 : f32
    %27 = vector.broadcast %cst_15 : f32 to vector<2x49xf32>
    %28 = arith.cmpf ogt, %26, %27 : vector<2x49xf32>
    %29 = arith.extui %28 : vector<2x49xi1> to vector<2x49xi32>
    %30 = arith.sitofp %29 : vector<2x49xi32> to vector<2x49xf32>
    %c0_16 = arith.constant 0 : index
    %c0_17 = arith.constant 0 : index
    %c0_18 = arith.constant 0 : index
    %31 = vector.load %arg7[%c0_16, %c0_17, %c0_18] : memref<1x2x49xf32, #tpu.memory_space<vmem>>, vector<1x2x49xf32>
    %32 = vector.shape_cast %31 : vector<1x2x49xf32> to vector<2x49xf32>
    %33 = vector.shape_cast %30 : vector<2x49xf32> to vector<1x2x49xf32>
    tpu.vector_store %arg7[%c0_16, %c0_17, %c0_18], %33 {strides = array<i32>} : memref<1x2x49xf32, #tpu.memory_space<vmem>>, vector<1x2x49xf32>,
    return
  }
  func.func @transform_0(%arg0: i32) -> (i32, i32, i32) {
    %c0_i32 = arith.constant 0 : i32
    %c0_i32_0 = arith.constant 0 : i32
    %c0_i32_1 = arith.constant 0 : i32
    return %arg0, %c0_i32, %c0_i32_0 : i32, i32, i32
  }
  func.func @transform_1(%arg0: i32) -> (i32, i32) {
    %c0_i32 = arith.constant 0 : i32
    %c0_i32_0 = arith.constant 0 : i32
    %c0_i32_1 = arith.constant 0 : i32
    return %c0_i32, %c0_i32_0 : i32, i32
  }
  func.func @transform_2(%arg0: i32) -> (i32, i32) {
    %c0_i32 = arith.constant 0 : i32
    %c0_i32_0 = arith.constant 0 : i32
    %c0_i32_1 = arith.constant 0 : i32
    return %c0_i32, %c0_i32_0 : i32, i32
  }
  func.func @transform_3(%arg0: i32) -> (i32, i32) {
    %c0_i32 = arith.constant 0 : i32
    %c0_i32_0 = arith.constant 0 : i32
    %c0_i32_1 = arith.constant 0 : i32
    return %c0_i32, %c0_i32_0 : i32, i32
  }
  func.func @transform_4(%arg0: i32) -> (i32, i32) {
    %c0_i32 = arith.constant 0 : i32
    %c0_i32_0 = arith.constant 0 : i32
    %c0_i32_1 = arith.constant 0 : i32
    return %c0_i32, %c0_i32_0 : i32, i32
  }
  func.func @transform_5(%arg0: i32) -> (i32, i32) {
    %c0_i32 = arith.constant 0 : i32
    %c0_i32_0 = arith.constant 0 : i32
    %c0_i32_1 = arith.constant 0 : i32
    return %c0_i32, %c0_i32_0 : i32, i32
  }
  func.func @transform_6(%arg0: i32) -> (i32, i32, i32) {
    %c0_i32 = arith.constant 0 : i32
    %c0_i32_0 = arith.constant 0 : i32
    %c0_i32_1 = arith.constant 0 : i32
    return %arg0, %c0_i32, %c0_i32_0 : i32, i32, i32
  }
}

</mosaic_0001>

<bundles_post_ra>
// kernel: tpu_custom_call.1
= control target key start
LH: loop header
LB: loop body
LE: loop exit
PB: predicated region body
PF: predicated region fallthrough
CT: control target
= control target key end

     0   :  { %11 = vsyncpa [#allocation3], 0  ;;  %s1108_s0 = inlined_call_operand.vmem [shape: bf16[2,16,256], index: 0, kind: input, shape index: {}]   ;;  %s1109_s1 = inlined_call_operand.vmem [shape: bf16[8,144], index: 1, kind: input, shape index: {}]   ;;  %s1110_s2 = inlined_call_operand.vmem [shape: f32[8,1], index: 2, kind: input, shape index: {}]   ;;  %s1111_s3 = inlined_call_operand.vmem [shape: bf16[222,49], index: 3, kind: input, shape index: {}]   ;;  %s1112_s4 = inlined_call_operand.vmem [shape: f32[2,8], index: 4, kind: input, shape index: {}]   ;;  %s1113_s5 = inlined_call_operand.vmem [shape: f32[2,1], index: 5, kind: input, shape index: {}]   ;;  %s1114_s6 = inlined_call_operand.hbm [shape: f32[2,2,49], index: 6, kind: output, shape index: {}]  }
   0x1   :  { %13 = vsyncpa [#allocation3 + $0x1], 0  ;;  %s930_s21 = smov 0   ;;  %s932_s22 = smov 0  }
   0x2   :  { %s934_s23 = smov 0   ;;  %s936_s24 = smov 0  }
   0x3 LB: > { %s951_s25 = sadd.s32 4294967295, %s881_s24   ;;  %s707_s26 = sadd.s32 4294967294, %s881_s24   ;;  %s881_s24 = sphi %s936_s24, %s1120_s24   ;;  %s877_s23 = sphi %s934_s23, %s1119_s23   ;;  %s873_s22 = sphi %s932_s22, %s1118_s22   ;;  %s869_s21 = sphi %s930_s21, %s1117_s21  }
   0x4   : > { %s955_s27 = sadd.s32 1, %s881_s24   ;;  %s157_s28 = sadd.s32 1, %s877_s23 }
   0x5   : > { %s154_s29 = ssub.s32 %s881_s24, %s955_s27  ;;  %p167_p0 = scmp.ne.s32.totalorder %s877_s23, %s873_s22 }
   0x6   : > { %p155_p1 = scmp.eq.s32.totalorder %s154_s29, 0  ;;  %p168_p2 = scmp.eq.s32.totalorder %s951_s25, 1 }
   0x7   : > { %p173_p3 = scmp.ne.s32.totalorder %s873_s22, %s869_s21  ;;  %p174_p4 = scmp.eq.s32.totalorder %s707_s26, 1 }
   0x8   : > { %s966_s30 = scalar_select %p155_p1, %s877_s23, %s157_s28  }
   0x9   : > { %p968_p5 = por %p168_p2, %p167_p0  ;;  %p972_p6 = por %p174_p4, %p173_p3 }
   0xa   : > { %p710_p7 = scmp.ge.s32.totalorder %s881_s24, 1  ;;  %p215_p8 = scmp.lt.s32.totalorder %s881_s24, 3 }
   0xc   : > { %p216_p9 = pnand %p710_p7, %p215_p8 }
   0xd   : > { %p245_p10 = scmp.lt.s32.totalorder (!%p216_p9), %s951_s25, 1  ;;  %s883_s14 = smov (!%p216_p9), 126   ;;  %v986_v2 = vld [vmem:[%s1109_s1] sm:$0xff] (!%p216_p9)  ;;  %vm370_vm0 = vcmask (!%p216_p9), 130048   ;;  %v890_v5 = vmov (!%p216_p9), 0   ;;  %v806_v6 = vld [vmem:[%s1111_s3 + $0x8] sm:$0xff] (!%p216_p9)  }
   0xe   : > { %219 = sbr.rel (%p216_p9) target bundleno = 840 (0x348), region = 44  ;;  %s884_s15 = smov (!%p216_p9), 127   ;;  %v717_v3 = vcombine.high (!%p216_p9), %v986_v2, %v986_v2  ;;  %v805_v4 = vld [vmem:[%s1111_s3] sm:$0xff] (!%p216_p9)   ;;  %798 = vset.pattern.permute.xlu0 (!%p216_p9), %v890_v5  ;;  %510 = vmatprep.subr.bf16.mxu1 (!%p216_p9), %v890_v5  ;;  %v807_v8 = vld [vmem:[%s1111_s3 + $0x10] sm:$0xff] (!%p216_p9)   ;;  %v808_v9 = vld [vmem:[%s1111_s3 + $0x18] sm:$0xff] (!%p216_p9)   ;;  %vm299_vm1 = vcmask (!%p216_p9), 1039360   ;;  %v716_v42 = vcombine.low (!%p216_p9), %v986_v2, %v986_v2 }
   0xf   : > { %s885_s16 = smov (!%p216_p9), 112   ;;  %s886_s17 = smov (!%p216_p9), 111   ;;  %511 = vmatpush1.bf16.msra.mxu1 (!%p216_p9), %v805_v4  ;;  %799 = vset.pattern.permute.xlu1 (!%p216_p9), %v890_v5  ;;  %v280_v7 = vld [vmem:[%s1110_s2] sm:$0xff] (!%p216_p9)  ;;  %v810_v11 = vld [vmem:[%s1111_s3 + $0x28] sm:$0xff] (!%p216_p9)   ;;  %v811_v12 = vld [vmem:[%s1111_s3 + $0x30] sm:$0xff] (!%p216_p9)   ;;  %vm307_vm2 = vcmask (!%p216_p9), 1031168  }
  0x10   : > { %s887_s18 = smov (!%p216_p9), 110   ;;  %s888_s26 = smov (!%p216_p9), 96   ;;  %718 = vmatprep.mubr.msk.bf16.mxu0 (!%p216_p9), %vm370_vm0, %v717_v3  ;;  %512 = vmatprep.subr.bf16.mxu1 (!%p216_p9), %v890_v5  ;;  %v809_v10 = vld [vmem:[%s1111_s3 + $0x20] sm:$0xff] (!%p216_p9)   ;;  %v812_v13 = vld [vmem:[%s1111_s3 + $0x38] sm:$0xff] (!%p216_p9)   ;;  %v814_v15 = vld [vmem:[%s1111_s3 + $0x48] sm:$0xff] (!%p216_p9)   ;;  %vm315_vm3 = vcmask (!%p216_p9), 916480  }
  0x11   : > { %s891_s12 = smov (!%p216_p9), 94   ;;  %v813_v14 = vld [vmem:[%s1111_s3 + $0x40] sm:$0xff] (!%p216_p9)   ;;  %v815_v16 = vld [vmem:[%s1111_s3 + $0x50] sm:$0xff] (!%p216_p9)   ;;  %v816_v17 = vld [vmem:[%s1111_s3 + $0x58] sm:$0xff] (!%p216_p9)   ;;  %vm323_vm4 = vcmask (!%p216_p9), 908288   ;;  %vm331_vm5 = vcmask (!%p216_p9), 900096  }
  0x12   : > { %vm339_vm6 = vcmask (!%p216_p9), 785408   ;;  %vm347_vm7 = vcmask (!%p216_p9), 777216   ;;  %vm355_vm8 = vcmask (!%p216_p9), 769024   ;;  %v817_v43 = vld [vmem:[%s1111_s3 + $0x60] sm:$0xff] (!%p216_p9)   ;;  %v818_v44 = vld [vmem:[%s1111_s3 + $0x68] sm:$0x7f] (!%p216_p9)  }
  0x13   : > { %513 = vmatpush1.bf16.msra.mxu1 (!%p216_p9), %v806_v6  ;;  %vm506_vm9 = vcmask (!%p216_p9), 1046528   ;;  %v892_v57 = vmov (!%p216_p9), 0.0   ;;  %vm893_vm10 = vmmov (!%p216_p9), 0   ;;  %v282_v58 = vld [vmem:[%s1113_s5] sm:$0x3] (!%p216_p9)  ;;  %vm555_vm11 = vcmask (!%p216_p9), 64512  }
  0x14   : > { %514 = vmatprep.subr.bf16.mxu1 (!%p216_p9), %v890_v5  ;;  %v508_v45 = vsel (!%p216_p9), %vm506_vm9, %v818_v44, 0  ;;  %v281_v59 = vld [vmem:[%s1112_s4] sm:$0x3] (!%p216_p9)  ;;  %vm632_vm12 = vcmask (!%p216_p9), 394240   ;;  %s894_s28 = smov (!%p216_p9), [#allocation2]  }
  0x15   : > { %s246_s9 = scalar_select %p245_p10, %s951_s25, 1 }
  0x16   : > { %s823_s29 = sshll.u32 %s894_s28, 4  ;;  %s824_s29 = int_to_ptr.vmem [resolvable:$false] %s823_s29 }
  0x17   : > { %s740_s10 = sshll.u32 %s246_s9, 4  ;;  %s889_s9 = smov 95   ;;  %515 = vmatpush1.bf16.msra.mxu1 %v807_v8 }
  0x18   : > { %s249_s13 = scalar_lea.vmem %s1108_s0, %s740_s10  ;;  %516 = vmatprep.subr.bf16.mxu1 %v890_v5 }
  0x19   : > { %v800_v0 = vld [vmem:[%s249_s13] ss:$8 sps:$4 sm:$0xff]   ;;  %v802_v1 = vld [vmem:[%s249_s13 + $0x4] ss:$8 sps:$4 sm:$0xff]   ;;  %s242_s13 = sand.u32 1, %s873_s22  }
  0x1a   : > { %303 = vrot.lane.b32.xlu1 %v800_v0, %s883_s14  ;;  %295 = vrot.lane.b32.xlu0 %v800_v0, %s884_s15 }
  0x1b   : > { %374 = vmatprep.subr.bf16.mxu0 %v802_v1  ;;  %517 = vmatpush1.bf16.msra.mxu1 %v808_v9 }
  0x1c   : > { %375 = vmatpush1.bf16.msra.mxu0 %v800_v0  ;;  %518 = vmatprep.subr.bf16.mxu1 %v890_v5 }
  0x1e   : > { %305 = vrot.lane.b32.xlu1 %v802_v1, %s883_s14  ;;  %297 = vrot.lane.b32.xlu0 %v802_v1, %s884_s15  ;;  %s711_s14 = sshll.u32 %s242_s13, 1  ;;  %s737_s15 = sshll.u32 %s951_s25, 5 }
  0x1f   : > { %519 = vmatpush1.bf16.msra.mxu1 %v809_v10  ;;  %s1066_s20 = scalar_lea.hbm %s1114_s6, %s737_s15 }
  0x20   : > { %520 = vmatprep.subr.bf16.mxu1 %v890_v5 }
  0x22   : > { %313 = vrot.lane.b32.xlu1 %v802_v1, %s885_s16  ;;  %311 = vrot.lane.b32.xlu0 %v800_v0, %s885_s16  ;;  %s244_s16 = scalar_lea.vmem [#allocation2], %s711_s14 }
  0x23   : > { %521 = vmatpush1.bf16.msra.mxu1 %v810_v11 }
  0x24   : > { %522 = vmatprep.subr.bf16.mxu1 %v890_v5 }
  0x26   : > { %321 = vrot.lane.b32.xlu1 %v802_v1, %s886_s17  ;;  %319 = vrot.lane.b32.xlu0 %v800_v0, %s886_s17  ;;  %s648_s17 = sshll.u32 %s244_s16, 4  ;;  %s1068_s17 = int_to_ptr.vmem [resolvable:$true] %s648_s17 }
  0x27   : > { %523 = vmatpush1.bf16.msra.mxu1 %v811_v12  ;;  %s819_s25 = scalar_lea.vmem %s1068_s17, 32  ;;  %p826_p0 = scmp.lt.s32.totalorder %s1068_s17, %s824_s29 }
  0x28   : > { %524 = vmatprep.subr.bf16.mxu1 %v890_v5  ;;  %p820_p11 = scmp.ne.s32.totalorder %s1068_s17, %s819_s25 }
  0x2a   : > { %329 = vrot.lane.b32.xlu1 %v802_v1, %s887_s18  ;;  %327 = vrot.lane.b32.xlu0 %v800_v0, %s887_s18  ;;  %p821_p12 = pnand %p820_p11, %p968_p5 }
  0x2b   : > { %525 = vmatpush1.bf16.msra.mxu1 %v812_v13 }
  0x2c   : > { %526 = vmatprep.subr.bf16.mxu1 %v890_v5  ;;  %p822_p13 = pneg %p821_p12 }
  0x2e   : > { %337 = vrot.lane.b32.xlu1 %v802_v1, %s888_s26  ;;  %335 = vrot.lane.b32.xlu0 %v800_v0, %s888_s26  ;;  %s635_s26 = scalar_lea.sflag [#allocation3], %s242_s13 }
  0x2f   : > { %527 = vmatpush1.bf16.msra.mxu1 %v813_v14 }
  0x30   : > { %528 = vmatprep.subr.bf16.mxu1 %v890_v5 }
  0x32   : > { %345 = vrot.lane.b32.xlu1 %v802_v1, %s889_s9  ;;  %343 = vrot.lane.b32.xlu0 %v800_v0, %s889_s9  ;;  %s825_s9 = scalar_lea.vmem %s824_s29, 64 }
  0x33   : > { %529 = vmatpush1.bf16.msra.mxu1 %v814_v15  ;;  %p827_p1 = scmp.lt.s32.totalorder %s825_s9, %s819_s25 }
  0x34   : > { %530 = vmatprep.subr.bf16.mxu1 %v890_v5 }
  0x35   : > { %p828_p2 = por %p827_p1, %p826_p0 }
  0x36   : > { %353 = vrot.lane.b32.xlu1 %v802_v1, %s891_s12  ;;  %351 = vrot.lane.b32.xlu0 %v800_v0, %s891_s12 }
  0x37   : > { %531 = vmatpush1.bf16.msra.mxu1 %v815_v16  ;;  %p829_p3 = pnand %p828_p2, %p822_p13 }
  0x38   : > { %532 = vmatprep.subr.bf16.mxu1 %v890_v5 }
  0x3a   : > { %361 = vperm.xlu0 %798, %v280_v7   ;;  %552 = vperm.xlu1 %799, %v282_v58  }
  0x3b   : > { %533 = vmatpush1.bf16.msra.mxu1 %v816_v17 }
  0x3c   : > { %534 = vmatprep.subr.bf16.mxu1 %v890_v5 }
  0x3f   : > { %535 = vmatpush1.bf16.msra.mxu1 %v817_v43 }
  0x40   : > { %536 = vmatprep.subr.bf16.mxu1 %v890_v5 }
  0x43   : > { %537 = vmatpush1.bf16.msra.mxu1 %v508_v45 }
  0x8c   : > { %v304_v18 = vpop.permute.xlu1 %303  ;;  %v296_v19 = vpop.permute.xlu0 %295 }
  0x90   : > { %v306_v20 = vpop.permute.xlu1 %305  ;;  %v298_v21 = vpop.permute.xlu0 %297 }
  0x91   : > { %376 = vmatprep.subr.bf16.mxu0 %v298_v21  ;;  %v300_v22 = vsel %vm299_vm1, %v296_v19, %v298_v21  ;;  %v308_v25 = vsel %vm307_vm2, %v304_v18, %v306_v20 }
  0x92   : > { %377 = vmatpush1.bf16.msra.mxu0 %v300_v22 }
  0x93   : > { %378 = vmatprep.subr.bf16.mxu0 %v306_v20 }
  0x94   : > { %v314_v23 = vpop.permute.xlu1 %313  ;;  %v312_v24 = vpop.permute.xlu0 %311 }
  0x95   : > { %v316_v26 = vsel %vm315_vm3, %v312_v24, %v314_v23 }
  0x96   : > { %379 = vmatpush1.bf16.msra.mxu0 %v308_v25 }
  0x97   : > { %380 = vmatprep.subr.bf16.mxu0 %v314_v23 }
  0x98   : > { %v322_v27 = vpop.permute.xlu1 %321  ;;  %v320_v28 = vpop.permute.xlu0 %319 }
  0x99   : > { %v324_v29 = vsel %vm323_vm4, %v320_v28, %v322_v27 }
  0x9a   : > { %381 = vmatpush1.bf16.msra.mxu0 %v316_v26 }
  0x9b   : > { %382 = vmatprep.subr.bf16.mxu0 %v322_v27 }
  0x9c   : > { %v330_v30 = vpop.permute.xlu1 %329  ;;  %v328_v31 = vpop.permute.xlu0 %327 }
  0x9d   : > { %v332_v32 = vsel %vm331_vm5, %v328_v31, %v330_v30 }
  0x9e   : > { %383 = vmatpush1.bf16.msra.mxu0 %v324_v29 }
  0x9f   : > { %384 = vmatprep.subr.bf16.mxu0 %v330_v30 }
  0xa0   : > { %v338_v33 = vpop.permute.xlu1 %337  ;;  %v336_v34 = vpop.permute.xlu0 %335 }
  0xa1   : > { %v340_v35 = vsel %vm339_vm6, %v336_v34, %v338_v33 }
  0xa2   : > { %385 = vmatpush1.bf16.msra.mxu0 %v332_v32 }
  0xa3   : > { %386 = vmatprep.subr.bf16.mxu0 %v338_v33 }
  0xa4   : > { %v346_v36 = vpop.permute.xlu1 %345  ;;  %v344_v37 = vpop.permute.xlu0 %343 }
  0xa5   : > { %v348_v38 = vsel %vm347_vm7, %v344_v37, %v346_v36 }
  0xa6   : > { %387 = vmatpush1.bf16.msra.mxu0 %v340_v35 }
  0xa7   : > { %388 = vmatprep.subr.bf16.mxu0 %v346_v36 }
  0xa8   : > { %v354_v39 = vpop.permute.xlu1 %353  ;;  %v352_v40 = vpop.permute.xlu0 %351 }
  0xa9   : > { %v356_v41 = vsel %vm355_vm8, %v352_v40, %v354_v39 }
  0xaa   : > { %389 = vmatpush1.bf16.msra.mxu0 %v348_v38 }
  0xab   : > { %390 = vmatprep.subr.bf16.mxu0 %v354_v39 }
  0xae   : > { %391 = vmatpush1.bf16.msra.mxu0 %v356_v41 }
  0xaf   : > { %743 = vmatprep.subr.mxu0 %v892_v57 }
  0xb1   : > { %407 = vmatmul.mubr.bf16.vlgmr.msra.gmra.mrb[0].mxu0 %v716_v42 }
  0xb2   : > { %745 = vmatprep.mubr.msk.f32.mxu0 %vm893_vm10, %v892_v57 }
  0xb9   : > { %v362_v46 = vpop.permute.xlu0 %361  ;;  %v553_v0 = vpop.permute.xlu1 %552 }
 0x184   : > { %v408_v47 = vpop.f32.mrb[0].mxu0 }
 0x185   : > { %v409_v48 = vadd.f32 %v408_v47, %v362_v46  ;;  %v410_v49 = vpop.f32.mrb[1].mxu0 }
 0x186   : > { %v411_v50 = vadd.f32 %v410_v49, %v362_v46  ;;  %v412_v51 = vpop.f32.mrb[2].mxu0 }
 0x187   : > { %v415_v52 = vmax.f32 %v409_v48, 0.0  ;;  %v413_v53 = vpop.f32.mrb[3].mxu0 }
 0x188   : > { %v416_v54 = vmax.f32 %v411_v50, 0.0 }
 0x189   : > { %v417_v56 = vpack.c.bf16 %v415_v52, %v415_v52 }
 0x18a   : > { %v418_v55 = vpack.c.bf16 %v416_v54, %v416_v54 }
 0x18c   : > { %733 = vmatprep.mubr.msk.bf16.mxu1 %vm355_vm8, %v418_v55 }
 0x18d   : > { %543 = vmatmul.mubr.bf16.vlgmr.msra.gmra.mrb[0].mxu1 %v417_v56 }
 0x260   : > { %v544_v60 = vpop.f32.mrb[0].mxu1 }
 0x261   : > { %v546_v61 = vpop.f32.mrb[1].mxu1  ;;  %744 = vmatpush3.msra.mxu0 %v544_v60 }
 0x262   : > { %v547_v62 = vpop.f32.mrb[2].mxu1  ;;  %746 = vmatmul.mubr.msk.f32.vlgmr.msra.gmra.mrb[4].mxu0 %vm555_vm11, %v281_v59 }
 0x263   : > { %v548_v63 = vpop.f32.mrb[3].mxu1 }
 0x335   : > { %v625_v1 = vpop.f32.mrb[4].mxu0 }
 0x336   : > { %v626_v2 = vadd.f32 %v625_v1, %v553_v0  ;;  %v747_v3 = vpop.f32.mrb[5].mxu0 }
 0x338   : > { %vm629_vm13 = vcmp.gt.f32.partialorder %v626_v2, 0.0 }
 0x339   : > { %v735_v4 = vsel %vm629_vm13, 1.0, %v892_v57 }
 0x33a   : > { %633 = vst.msk [vmem:[%s244_s16] sm:$0x3] %vm632_vm12, %v735_v4 }
 0x33b   : > { %832 = shalt.err (!%p829_p3)
}
 0x33c   : > { %s833_s10 = scalar_lea.hbm %s1066_s20, 32  ;;  %s837_s13 = scalar_lea.hbm %s1114_s6, 64 }
 0x33d   : > { %p834_p4 = scmp.ne.s32.totalorder %s1066_s20, %s833_s10  ;;  %p838_p9 = scmp.lt.u32.totalorder %s1066_s20, %s1114_s6 }
 0x33e   : > { %p839_p10 = scmp.lt.u32.totalorder %s837_s13, %s833_s10  ;;  %p841_p12 = scmp.lt.u32.totalorder %s833_s10, %s1066_s20 }
 0x33f   : > { %p835_p7 = pnand %p834_p4, %p968_p5 }
 0x340   : > { %p840_p11 = por %p839_p10, %p838_p9 }
 0x341   : > { %p836_p8 = pneg %p835_p7 }
 0x342   : > { %p842_p13 = por %p841_p12, %p840_p11 }
 0x344   : > { %p843_p0 = pnand %p842_p13, %p836_p8 }
 0x346   : > { %846 = shalt.err (!%p843_p0)
}
 0x347   : > { %748 = dma.vmem_to_hbm [thread:$0]  (%p968_p5), %s1068_s17, 32, %s1066_s20, %s635_s26  }
 0x348 PF: > { %p754_p1 = scmp.ge.s32.totalorder %s881_s24, 2  ;;  %s660_s16 = sand.u32 1, %s869_s21  }
 0x349   : > { %s661_s18 = scalar_lea.sflag [#allocation3], %s660_s16 }
 0x34a   : > { %p751_p2 = pnand %p754_p1, %p972_p6 }
 0x34c   : > { %864 = dma.done.wait (!%p751_p2), %s661_s18, 32  }
 0x34d   : > { %866 = vsyncadd (!%p751_p2), %s661_s18, 4294967264  ;;  %p16_p3 = scmp.ge.s32.totalorder %s955_s27, 4   ;;  %s1117_s21 = smov %s873_s22 }
 0x34e   : > { %s1118_s22 = smov %s877_s23  ;;  %s1119_s23 = smov %s966_s30 }
 0x34f   : > { %s1120_s24 = smov %s955_s27  ;;  %18 = sbr.rel (!%p16_p3) target bundleno = 3 (0x3), region = 79 }
 0x356   :  { %666 = vsyncpa [#allocation3], 1 }
 0x357   :  { %668 = vsyncpa [#allocation3 + $0x1], 1 }

</bundles_post_ra>
